<compile_context>
chip_gen: v6e
topology: v6e:2x2x1
jax: 0.10.0
libtpu: 0.0.40
codegen_flags: <defaults>
</compile_context>

<pallas_src>
import functools

import jax
import jax.numpy as jnp
from jax.experimental import pallas as pl
from jax.experimental.pallas import tpu as pltpu

_VMEM_LIMIT_BYTES = 32 * 1024 * 1024  # > v5e's 16 MiB scoped default, < v7x's 64 MiB
_TILE_BUDGET_BYTES = 4 * 1024 * 1024  # per x-tile budget; ~3x (in+out, double-buffered)


def _choose_tiles(rows: int, hw: int, itemsize: int):
    """Pick (TR, THW) respecting the (8, 128) constraint ('divisible or full')
    and a per-tile VMEM budget so pipelining has headroom on every chip."""
    # Lane (last) dim: full extent if small, else the largest multiple of 128
    # that fits half the budget alone (cap 2048 keeps DMA granularity sane).
    if hw <= 2048:
        thw = hw
    else:
        thw = 2048
    # Sublane dim: full extent if small, else a multiple of 8 sized to budget.
    if rows <= 256:
        tr = rows
    else:
        max_tr = max(8, (_TILE_BUDGET_BYTES // (thw * itemsize)) // 8 * 8)
        tr = min(512, max_tr)
    return tr, thw


def _make_pool_sum_kernel(hw_total: int, thw: int):
    """Pass 1: accumulate per-row spatial sums across the HW grid axis."""
    needs_mask = (hw_total % thw) != 0  # static: only mask a ragged tail tile

    def kernel(x_ref, sum_ref):
        # x_ref: (TR, THW); sum_ref: (TR, 1) resident across the hw grid axis.
        hw_idx = pl.program_id(1)

        @pl.when(hw_idx == 0)
        def _():
            sum_ref[...] = jnp.zeros_like(sum_ref)

        x = x_ref[...].astype(jnp.float32)
        if needs_mask:
            lane = jax.lax.broadcasted_iota(jnp.int32, x.shape, 1)
            valid = (hw_idx * thw + lane) < hw_total
            x = jnp.where(valid, x, 0.0)

        sum_ref[...] = sum_ref[...] + jnp.sum(x, axis=-1, keepdims=True)

    return kernel


def _scale_kernel(x_ref, gate_ref, o_ref):
    # x_ref: (TR, THW); gate_ref: (TR, 1); broadcast multiply on the VPU.
    o_ref[...] = x_ref[...] * gate_ref[...]


@functools.partial(jax.jit)
def channel_attention(x_nchw, w1, b1, w2, b2):
    """x_nchw: (B, C, H, W); w1: (C, Cr); b1: (Cr,); w2: (Cr, C); b2: (C,)."""
    B, C, H, W = x_nchw.shape
    HW = H * W
    R = B * C

    x2d = x_nchw.reshape(R, HW)
    tr, thw = _choose_tiles(R, HW, x2d.dtype.itemsize)
    grid = (pl.cdiv(R, tr), pl.cdiv(HW, thw))

    # ---- Pass 1: per-(b, c) spatial sums (pipelined reduction over HW) -----
    sums = pl.pallas_call(
        _make_pool_sum_kernel(HW, thw),
        out_shape=jax.ShapeDtypeStruct((R, 1), jnp.float32),
        grid_spec=pltpu.PrefetchScalarGridSpec(
            num_scalar_prefetch=0,
            grid=grid,
            in_specs=[pl.BlockSpec((tr, thw), lambda r, h: (r, h))],
            out_specs=pl.BlockSpec((tr, 1), lambda r, h: (r, 0)),
        ),
        compiler_params=pltpu.CompilerParams(
            dimension_semantics=("parallel", "arbitrary"),
            vmem_limit_bytes=_VMEM_LIMIT_BYTES,
        ),
    )(x2d)

    # ---- Tiny gate MLP in plain JAX (Cr = C/16: MXU-irrelevant FLOPs) ------
    # TODO(synk): shapes (B, C) with C/16 hidden are too small/misaligned for a
    # useful MXU kernel; kept in XLA on purpose.
    avg = sums.reshape(B, C) / jnp.float32(HW)                 # AdaptiveAvgPool2d(1)
    h1 = jnp.maximum(avg @ w1.astype(jnp.float32) + b1.astype(jnp.float32), 0.0)
    gate = jax.nn.sigmoid(h1 @ w2.astype(jnp.float32) + b2.astype(jnp.float32))
    gate2d = gate.reshape(R, 1).astype(x2d.dtype)              # (B*C, 1)

    # ---- Pass 2: lane-dense, fully parallel rescale out = x * gate ---------
    out2d = pl.pallas_call(
        _scale_kernel,
        out_shape=jax.ShapeDtypeStruct((R, HW), x2d.dtype),
        grid_spec=pltpu.PrefetchScalarGridSpec(
            num_scalar_prefetch=0,
            grid=grid,
            in_specs=[
                pl.BlockSpec((tr, thw), lambda r, h: (r, h)),
                pl.BlockSpec((tr, 1), lambda r, h: (r, 0)),
            ],
            out_specs=pl.BlockSpec((tr, thw), lambda r, h: (r, h)),
        ),
        compiler_params=pltpu.CompilerParams(
            dimension_semantics=("parallel", "parallel"),
            vmem_limit_bytes=_VMEM_LIMIT_BYTES,
        ),
    )(x2d, gate2d)

    return out2d.reshape(B, C, H, W)


def reference(x_nchw, w1, b1, w2, b2):
    """Pure-JAX reference mirroring the PyTorch forward."""
    y = jnp.mean(x_nchw, axis=(2, 3))                 # AdaptiveAvgPool2d(1)
    y = jnp.maximum(y @ w1 + b1, 0.0)                 # fc1 + relu
    y = jax.nn.sigmoid(y @ w2 + b2)                   # fc2 + sigmoid
    return x_nchw * y[:, :, None, None]


if __name__ == "__main__":
    # Small shapes consistent with the module: reduction_ratio=16 needs C >= 16.
    # HW = 16*16 = 256 keeps the lane (last) dimension a multiple of 128.
    B, C, H, W = 2, 32, 16, 16
    reduction_ratio = 16
    Cr = C // reduction_ratio

    key = jax.random.PRNGKey(0)
    kx, kw1, kb1, kw2, kb2 = jax.random.split(key, 5)

    x = jax.random.normal(kx, (B, C, H, W), dtype=jnp.float32)

    # Deterministic parameter init (nn.Linear-style uniform bounds).
    bound1 = 1.0 / (C ** 0.5)
    bound2 = 1.0 / (Cr ** 0.5)
    # Stored already transposed relative to PyTorch (y @ W works directly).
    w1 = jax.random.uniform(kw1, (C, Cr), jnp.float32, -bound1, bound1)
    b1 = jax.random.uniform(kb1, (Cr,), jnp.float32, -bound1, bound1)
    w2 = jax.random.uniform(kw2, (Cr, C), jnp.float32, -bound2, bound2)
    b2 = jax.random.uniform(kb2, (C,), jnp.float32, -bound2, bound2)

    out = channel_attention(x, w1, b1, w2, b2)
    out = jax.block_until_ready(out)

    ref = reference(x, w1, b1, w2, b2)
    assert out.shape == (B, C, H, W)
    assert jnp.allclose(out, ref, atol=1e-5, rtol=1e-5), "mismatch vs reference"

    print("KERNEL_OK")
</pallas_src>

<mosaic_0001>
module attributes {stable_mosaic.version = 11 : i64} {
  func.func @kernel(%arg0: i32, %arg1: i32, %arg2: memref<64x256xf32, #tpu.memory_space<vmem>>, %arg3: memref<64x1xf32, #tpu.memory_space<vmem>>) attributes {dimension_semantics = [#tpu.dimension_semantics<parallel>, #tpu.dimension_semantics<arbitrary>], iteration_bounds = array<i64: 1, 1>, scalar_prefetch = 0 : i64, scratch_operands = 0 : i64, tpu.core_type = #tpu.core_type<tc>, window_params = [{transform_indices = @transform_0, window_bounds = array<i64: 64, 256>}, {transform_indices = @transform_1, window_bounds = array<i64: 64, 1>}]} {
    %c0_i32 = arith.constant 0 : i32
    %0 = arith.cmpi eq, %arg1, %c0_i32 : i32
    %1 = arith.extui %0 : i1 to i32
    %c0_i32_0 = arith.constant 0 : i32
    %2 = arith.cmpi ne, %1, %c0_i32_0 : i32
    scf.if %2 {
      %cst_6 = arith.constant 0.000000e+00 : f32
      %9 = vector.broadcast %cst_6 : f32 to vector<64x1xf32>
      %c0_7 = arith.constant 0 : index
      %c0_8 = arith.constant 0 : index
      %10 = vector.load %arg3[%c0_7, %c0_8] : memref<64x1xf32, #tpu.memory_space<vmem>>, vector<64x1xf32>
      tpu.vector_store %arg3[%c0_7, %c0_8], %9 {strides = array<i32>} : memref<64x1xf32, #tpu.memory_space<vmem>>, vector<64x1xf32>,
    } else {
    }
    %c0 = arith.constant 0 : index
    %c0_1 = arith.constant 0 : index
    %3 = vector.load %arg2[%c0, %c0_1] : memref<64x256xf32, #tpu.memory_space<vmem>>, vector<64x256xf32>
    %c0_2 = arith.constant 0 : index
    %c0_3 = arith.constant 0 : index
    %4 = vector.load %arg3[%c0_2, %c0_3] : memref<64x1xf32, #tpu.memory_space<vmem>>, vector<64x1xf32>
    %cst = arith.constant dense<0.000000e+00> : vector<64xf32>
    %5 = vector.multi_reduction <add>, %3, %cst [1] : vector<64x256xf32> to vector<64xf32>
    %6 = vector.shape_cast %5 : vector<64xf32> to vector<64x1xf32>
    %7 = arith.addf %4, %6 : vector<64x1xf32>
    %c0_4 = arith.constant 0 : index
    %c0_5 = arith.constant 0 : index
    %8 = vector.load %arg3[%c0_4, %c0_5] : memref<64x1xf32, #tpu.memory_space<vmem>>, vector<64x1xf32>
    tpu.vector_store %arg3[%c0_4, %c0_5], %7 {strides = array<i32>} : memref<64x1xf32, #tpu.memory_space<vmem>>, vector<64x1xf32>,
    return
  }
  func.func @transform_0(%arg0: i32, %arg1: i32) -> (i32, i32) {
    %c0_i32 = arith.constant 0 : i32
    return %arg0, %arg1 : i32, i32
  }
  func.func @transform_1(%arg0: i32, %arg1: i32) -> (i32, i32) {
    %c0_i32 = arith.constant 0 : i32
    %c0_i32_0 = arith.constant 0 : i32
    return %arg0, %c0_i32 : i32, i32
  }
}

module attributes {stable_mosaic.version = 11 : i64} {
  func.func @_scale_kernel(%arg0: i32, %arg1: i32, %arg2: memref<64x256xf32, #tpu.memory_space<vmem>>, %arg3: memref<64x1xf32, #tpu.memory_space<vmem>>, %arg4: memref<64x256xf32, #tpu.memory_space<vmem>>) attributes {dimension_semantics = [#tpu.dimension_semantics<parallel>, #tpu.dimension_semantics<parallel>], iteration_bounds = array<i64: 1, 1>, scalar_prefetch = 0 : i64, scratch_operands = 0 : i64, tpu.core_type = #tpu.core_type<tc>, window_params = [{transform_indices = @transform_0, window_bounds = array<i64: 64, 256>}, {transform_indices = @transform_1, window_bounds = array<i64: 64, 1>}, {transform_indices = @transform_2, window_bounds = array<i64: 64, 256>}]} {
    %c0 = arith.constant 0 : index
    %c0_0 = arith.constant 0 : index
    %0 = vector.load %arg2[%c0, %c0_0] : memref<64x256xf32, #tpu.memory_space<vmem>>, vector<64x256xf32>
    %c0_1 = arith.constant 0 : index
    %c0_2 = arith.constant 0 : index
    %1 = vector.load %arg3[%c0_1, %c0_2] : memref<64x1xf32, #tpu.memory_space<vmem>>, vector<64x1xf32>
    %2 = vector.broadcast %1 : vector<64x1xf32> to vector<64x256xf32>
    %3 = arith.mulf %0, %2 : vector<64x256xf32>
    %c0_3 = arith.constant 0 : index
    %c0_4 = arith.constant 0 : index
    %4 = vector.load %arg4[%c0_3, %c0_4] : memref<64x256xf32, #tpu.memory_space<vmem>>, vector<64x256xf32>
    tpu.vector_store %arg4[%c0_3, %c0_4], %3 {strides = array<i32>} : memref<64x256xf32, #tpu.memory_space<vmem>>, vector<64x256xf32>,
    return
  }
  func.func @transform_0(%arg0: i32, %arg1: i32) -> (i32, i32) {
    %c0_i32 = arith.constant 0 : i32
    return %arg0, %arg1 : i32, i32
  }
  func.func @transform_1(%arg0: i32, %arg1: i32) -> (i32, i32) {
    %c0_i32 = arith.constant 0 : i32
    %c0_i32_0 = arith.constant 0 : i32
    return %arg0, %c0_i32 : i32, i32
  }
  func.func @transform_2(%arg0: i32, %arg1: i32) -> (i32, i32) {
    %c0_i32 = arith.constant 0 : i32
    return %arg0, %arg1 : i32, i32
  }
}

</mosaic_0001>

<bundles_post_ra>
// kernel: channel_attention.2
= control target key start
LH: loop header
LB: loop body
LE: loop exit
PB: predicated region body
PF: predicated region fallthrough
CT: control target
= control target key end

     0   :  { %vm12_vm0 = vcmask 7168   ;;  %v91_v3 = vmov 0.0   ;;  %s238_s0 = inlined_call_operand.vmem [shape: f32[64,256], index: 0, kind: input, shape index: {}]   ;;  %s239_s1 = inlined_call_operand.vmem [shape: f32[64,1], index: 1, kind: output, shape index: {}]  }
   0x1   :  { %v25_v0 = vld [vmem:[%s238_s0 + $0x20] sm:$0xff]  ;;  %v26_v1 = vld [vmem:[%s238_s0 + $0x28] sm:$0xff]  ;;  %15 = vst.msk [vmem:[%s239_s1 + $0x10] sm:$0xff] %vm12_vm0, %v91_v3  ;;  %13 = vst.msk [vmem:[%s239_s1] sm:$0xff] %vm12_vm0, %v91_v3 }
   0x2   :  { %v21_v2 = vld [vmem:[%s238_s0] sm:$0xff]  ;;  %14 = vst.msk [vmem:[%s239_s1 + $0x8] sm:$0xff] %vm12_vm0, %v91_v3  ;;  %16 = vst.msk [vmem:[%s239_s1 + $0x18] sm:$0xff] %vm12_vm0, %v91_v3  ;;  %v51_v4 = vadd.f32 %v26_v1, %v25_v0  ;;  %v22_v5 = vld [vmem:[%s238_s0 + $0x8] sm:$0xff] }
   0x3   :  { %17 = vst.msk [vmem:[%s239_s1 + $0x20] sm:$0xff] %vm12_vm0, %v91_v3  ;;  %18 = vst.msk [vmem:[%s239_s1 + $0x28] sm:$0xff] %vm12_vm0, %v91_v3  ;;  %v27_v6 = vld [vmem:[%s238_s0 + $0x30] sm:$0xff]  ;;  %v28_v7 = vld [vmem:[%s238_s0 + $0x38] sm:$0xff]  ;;  %v45_v8 = vadd.f32 %v22_v5, %v21_v2 }
   0x4   :  { %19 = vst.msk [vmem:[%s239_s1 + $0x30] sm:$0xff] %vm12_vm0, %v91_v3  ;;  %20 = vst.msk [vmem:[%s239_s1 + $0x38] sm:$0xff] %vm12_vm0, %v91_v3  ;;  %v23_v9 = vld [vmem:[%s238_s0 + $0x10] sm:$0xff]  ;;  %v24_v10 = vld [vmem:[%s238_s0 + $0x18] sm:$0xff]  ;;  %52 = vadd.xlane.f32.xlu1 %v51_v4  ;;  %v54_v11 = vadd.f32 %v28_v7, %v27_v6 }
   0x5   :  { %46 = vadd.xlane.f32.xlu0 %v45_v8  ;;  %v48_v12 = vadd.f32 %v24_v10, %v23_v9  ;;  %v31_v13 = vld [vmem:[%s238_s0 + $0x50] sm:$0xff]  ;;  %v32_v14 = vld [vmem:[%s238_s0 + $0x58] sm:$0xff]  ;;  %v29_v15 = vld [vmem:[%s238_s0 + $0x40] sm:$0xff] }
   0x6   :  { %v30_v16 = vld [vmem:[%s238_s0 + $0x48] sm:$0xff]  ;;  %v60_v17 = vadd.f32 %v32_v14, %v31_v13  ;;  %v35_v19 = vld [vmem:[%s238_s0 + $0x70] sm:$0xff]  ;;  %v36_v20 = vld [vmem:[%s238_s0 + $0x78] sm:$0xff] }
   0x7   :  { %v57_v18 = vadd.f32 %v30_v16, %v29_v15  ;;  %v33_v21 = vld [vmem:[%s238_s0 + $0x60] sm:$0xff]  ;;  %v34_v22 = vld [vmem:[%s238_s0 + $0x68] sm:$0xff]  ;;  %v66_v23 = vadd.f32 %v36_v20, %v35_v19 }
   0x8   :  { %55 = vadd.xlane.f32.xlu1 %v54_v11  ;;  %v63_v24 = vadd.f32 %v34_v22, %v33_v21  ;;  %v39_v25 = vld [vmem:[%s239_s1 + $0x10] sm:$0xff]  ;;  %v37_v26 = vld [vmem:[%s239_s1] sm:$0xff] }
   0x9   :  { %49 = vadd.xlane.f32.xlu0 %v48_v12  ;;  %v40_v31 = vld [vmem:[%s239_s1 + $0x18] sm:$0xff]  ;;  %v38_v32 = vld [vmem:[%s239_s1 + $0x8] sm:$0xff] }
   0xa   :  { %v42_v37 = vld [vmem:[%s239_s1 + $0x28] sm:$0xff]  ;;  %v41_v38 = vld [vmem:[%s239_s1 + $0x20] sm:$0xff] }
   0xb   :  { %v44_v43 = vld [vmem:[%s239_s1 + $0x38] sm:$0xff]  ;;  %v43_v44 = vld [vmem:[%s239_s1 + $0x30] sm:$0xff] }
   0xc   :  { %61 = vadd.xlane.f32.xlu1 %v60_v17 }
   0xd   :  { %58 = vadd.xlane.f32.xlu0 %v57_v18 }
  0x10   :  { %67 = vadd.xlane.f32.xlu1 %v66_v23 }
  0x11   :  { %64 = vadd.xlane.f32.xlu0 %v63_v24 }
  0x8d   :  { %v53_v27 = vpop.xlane.xlu1 %52 }
  0x8e   :  { %v71_v28 = vadd.f32 %v53_v27, %v39_v25  ;;  %v47_v29 = vpop.xlane.xlu0 %46 }
  0x8f   :  { %v69_v30 = vadd.f32 %v47_v29, %v37_v26 }
  0x90   :  { %80 = vst.msk [vmem:[%s239_s1 + $0x10] sm:$0xff] %vm12_vm0, %v71_v28 }
  0x91   :  { %78 = vst.msk [vmem:[%s239_s1] sm:$0xff] %vm12_vm0, %v69_v30  ;;  %v56_v33 = vpop.xlane.xlu1 %55 }
  0x92   :  { %v72_v34 = vadd.f32 %v56_v33, %v40_v31  ;;  %v50_v35 = vpop.xlane.xlu0 %49 }
  0x93   :  { %v70_v36 = vadd.f32 %v50_v35, %v38_v32 }
  0x94   :  { %81 = vst.msk [vmem:[%s239_s1 + $0x18] sm:$0xff] %vm12_vm0, %v72_v34 }
  0x95   :  { %79 = vst.msk [vmem:[%s239_s1 + $0x8] sm:$0xff] %vm12_vm0, %v70_v36  ;;  %v62_v39 = vpop.xlane.xlu1 %61 }
  0x96   :  { %v74_v40 = vadd.f32 %v62_v39, %v42_v37  ;;  %v59_v41 = vpop.xlane.xlu0 %58 }
  0x97   :  { %v73_v42 = vadd.f32 %v59_v41, %v41_v38 }
  0x98   :  { %83 = vst.msk [vmem:[%s239_s1 + $0x28] sm:$0xff] %vm12_vm0, %v74_v40 }
  0x99   :  { %82 = vst.msk [vmem:[%s239_s1 + $0x20] sm:$0xff] %vm12_vm0, %v73_v42  ;;  %v68_v45 = vpop.xlane.xlu1 %67 }
  0x9a   :  { %v76_v46 = vadd.f32 %v68_v45, %v44_v43  ;;  %v65_v47 = vpop.xlane.xlu0 %64 }
  0x9b   :  { %v75_v48 = vadd.f32 %v65_v47, %v43_v44 }
  0x9c   :  { %85 = vst.msk [vmem:[%s239_s1 + $0x38] sm:$0xff] %vm12_vm0, %v76_v46 }
  0x9d   :  { %84 = vst.msk [vmem:[%s239_s1 + $0x30] sm:$0xff] %vm12_vm0, %v75_v48 }

// kernel: channel_attention.3
= control target key start
LH: loop header
LB: loop body
LE: loop exit
PB: predicated region body
PF: predicated region fallthrough
CT: control target
= control target key end

     0   :  { %v114_v0 = vmov 0   ;;  %s250_s1 = inlined_call_operand.vmem [shape: f32[64,1], index: 1, kind: input, shape index: {}]   ;;  %s251_s0 = inlined_call_operand.vmem [shape: f32[64,256], index: 0, kind: input, shape index: {}]   ;;  %s252_s2 = inlined_call_operand.vmem [shape: f32[64,256], index: 2, kind: output, shape index: {}]  }
   0x1   :  { %113 = vset.pattern.permute.xlu1 %v114_v0  ;;  %112 = vset.pattern.permute.xlu0 %v114_v0  ;;  %v29_v1 = vld [vmem:[%s250_s1 + $0x10] sm:$0xff]  ;;  %v27_v2 = vld [vmem:[%s250_s1] sm:$0xff]  ;;  %v30_v3 = vld [vmem:[%s250_s1 + $0x18] sm:$0xff] }
   0x2   :  { %47 = vperm.xlu1 %113, %v29_v1   ;;  %37 = vperm.xlu0 %112, %v27_v2   ;;  %v28_v4 = vld [vmem:[%s250_s1 + $0x8] sm:$0xff]  ;;  %v31_v6 = vld [vmem:[%s250_s1 + $0x20] sm:$0xff]  ;;  %v34_v7 = vld [vmem:[%s250_s1 + $0x38] sm:$0xff] }
   0x3   :  { %v32_v5 = vld [vmem:[%s250_s1 + $0x28] sm:$0xff]  ;;  %v33_v8 = vld [vmem:[%s250_s1 + $0x30] sm:$0xff]  ;;  %v15_v9 = vld [vmem:[%s251_s0 + $0x20] sm:$0xff] }
   0x4   :  { %v16_v10 = vld [vmem:[%s251_s0 + $0x28] sm:$0xff]  ;;  %v11_v11 = vld [vmem:[%s251_s0] sm:$0xff]  ;;  %v17_v19 = vld [vmem:[%s251_s0 + $0x30] sm:$0xff] }
   0x5   :  { %v12_v12 = vld [vmem:[%s251_s0 + $0x8] sm:$0xff]  ;;  %v18_v20 = vld [vmem:[%s251_s0 + $0x38] sm:$0xff]  ;;  %v13_v21 = vld [vmem:[%s251_s0 + $0x10] sm:$0xff] }
   0x6   :  { %52 = vperm.xlu1 %113, %v30_v3   ;;  %42 = vperm.xlu0 %112, %v28_v4   ;;  %v14_v22 = vld [vmem:[%s251_s0 + $0x18] sm:$0xff]  ;;  %v21_v29 = vld [vmem:[%s251_s0 + $0x50] sm:$0xff]  ;;  %v19_v31 = vld [vmem:[%s251_s0 + $0x40] sm:$0xff] }
   0x7   :  { %v22_v30 = vld [vmem:[%s251_s0 + $0x58] sm:$0xff]  ;;  %v20_v32 = vld [vmem:[%s251_s0 + $0x48] sm:$0xff]  ;;  %v25_v39 = vld [vmem:[%s251_s0 + $0x70] sm:$0xff] }
   0x8   :  { %v26_v40 = vld [vmem:[%s251_s0 + $0x78] sm:$0xff]  ;;  %v23_v41 = vld [vmem:[%s251_s0 + $0x60] sm:$0xff]  ;;  %v24_v42 = vld [vmem:[%s251_s0 + $0x68] sm:$0xff] }
   0xa   :  { %62 = vperm.xlu1 %113, %v32_v5   ;;  %57 = vperm.xlu0 %112, %v31_v6  }
   0xe   :  { %72 = vperm.xlu1 %113, %v34_v7   ;;  %67 = vperm.xlu0 %112, %v33_v8  }
  0x7d   :  { %v48_v13 = vpop.permute.xlu1 %47  ;;  %v38_v14 = vpop.permute.xlu0 %37 }
  0x7e   :  { %v79_v15 = vmul.f32 %v48_v13, %v15_v9  ;;  %v80_v16 = vmul.f32 %v48_v13, %v16_v10  ;;  %v75_v17 = vmul.f32 %v38_v14, %v11_v11  ;;  %v76_v18 = vmul.f32 %v38_v14, %v12_v12 }
  0x80   :  { %95 = vst [vmem:[%s252_s2 + $0x20] sm:$0xff] %v79_v15  ;;  %96 = vst [vmem:[%s252_s2 + $0x28] sm:$0xff] %v80_v16 }
  0x81   :  { %91 = vst [vmem:[%s252_s2] sm:$0xff] %v75_v17  ;;  %92 = vst [vmem:[%s252_s2 + $0x8] sm:$0xff] %v76_v18  ;;  %v53_v23 = vpop.permute.xlu1 %52  ;;  %v43_v24 = vpop.permute.xlu0 %42 }
  0x82   :  { %v81_v25 = vmul.f32 %v53_v23, %v17_v19  ;;  %v82_v26 = vmul.f32 %v53_v23, %v18_v20  ;;  %v77_v27 = vmul.f32 %v43_v24, %v13_v21  ;;  %v78_v28 = vmul.f32 %v43_v24, %v14_v22 }
  0x84   :  { %97 = vst [vmem:[%s252_s2 + $0x30] sm:$0xff] %v81_v25  ;;  %98 = vst [vmem:[%s252_s2 + $0x38] sm:$0xff] %v82_v26 }
  0x85   :  { %93 = vst [vmem:[%s252_s2 + $0x10] sm:$0xff] %v77_v27  ;;  %94 = vst [vmem:[%s252_s2 + $0x18] sm:$0xff] %v78_v28  ;;  %v63_v33 = vpop.permute.xlu1 %62  ;;  %v58_v34 = vpop.permute.xlu0 %57 }
  0x86   :  { %v85_v35 = vmul.f32 %v63_v33, %v21_v29  ;;  %v86_v36 = vmul.f32 %v63_v33, %v22_v30  ;;  %v83_v37 = vmul.f32 %v58_v34, %v19_v31  ;;  %v84_v38 = vmul.f32 %v58_v34, %v20_v32 }
  0x88   :  { %101 = vst [vmem:[%s252_s2 + $0x50] sm:$0xff] %v85_v35  ;;  %102 = vst [vmem:[%s252_s2 + $0x58] sm:$0xff] %v86_v36 }
  0x89   :  { %99 = vst [vmem:[%s252_s2 + $0x40] sm:$0xff] %v83_v37  ;;  %100 = vst [vmem:[%s252_s2 + $0x48] sm:$0xff] %v84_v38  ;;  %v73_v43 = vpop.permute.xlu1 %72  ;;  %v68_v44 = vpop.permute.xlu0 %67 }
  0x8a   :  { %v89_v45 = vmul.f32 %v73_v43, %v25_v39  ;;  %v90_v46 = vmul.f32 %v73_v43, %v26_v40  ;;  %v87_v47 = vmul.f32 %v68_v44, %v23_v41  ;;  %v88_v48 = vmul.f32 %v68_v44, %v24_v42 }
  0x8c   :  { %105 = vst [vmem:[%s252_s2 + $0x70] sm:$0xff] %v89_v45  ;;  %106 = vst [vmem:[%s252_s2 + $0x78] sm:$0xff] %v90_v46 }
  0x8d   :  { %103 = vst [vmem:[%s252_s2 + $0x60] sm:$0xff] %v87_v47  ;;  %104 = vst [vmem:[%s252_s2 + $0x68] sm:$0xff] %v88_v48 }

</bundles_post_ra>
